<compile_context>
chip_gen: v7x
topology: tpu7x:2x2x1
jax: 0.10.0
libtpu: 0.0.40
codegen_flags: <defaults>
</compile_context>

<pallas_src>
from functools import partial

import jax
import jax.numpy as jnp
from jax import lax
from jax.experimental import pallas as pl
from jax.experimental.pallas import tpu as pltpu


def _round_up(x, m):
    return ((x + m - 1) // m) * m


def _conv_block_kernel(norm, prelu, residual, eps, H, W,
                       x_ref, w_ref, p_ref, mask_ref, out_ref):
    # x_ref   : (1, C_in_p, Lpad)    reflect-padded, channel-padded, spatially flattened input
    # w_ref   : (C_out, 9*C_in_p)    conv weight, tap-major / channel-minor
    # p_ref   : (C_out, 4)           [bias, gamma, beta, alpha] (f32)
    # mask_ref: (1, H*(W+2))         1.0 on real pixels, 0.0 on the 2 wrap columns per row
    # out_ref : (1, C_out, H*(W+2))
    Wp = W + 2
    HWP = H * Wp
    C_in_p = x_ref.shape[1]
    C_out = out_ref.shape[1]

    xflat = x_ref[0]                                    # (C_in_p, Lpad)

    # ---- im2col, built once per sample (tap t = dy*3 + dx, channel-minor) ----
    taps = [xflat[:, dy * Wp + dx: dy * Wp + dx + HWP]
            for dy in range(3) for dx in range(3)]      # 9 x (C_in_p, HWP)
    patches = jnp.concatenate(taps, axis=0)             # (9*C_in_p, HWP)

    # ---- single MXU contraction, K = 9*C_in_p, f32 accumulation ----
    acc = jnp.dot(w_ref[...], patches,
                  preferred_element_type=jnp.float32)   # (C_out, HWP) f32

    p = p_ref[...]                                      # (C_out, 4) f32
    y = acc + p[:, 0:1]                                 # conv bias

    # ---- GroupNorm(num_groups=1): one-pass stats over valid pixels of (C, H, W),
    #      normalize + affine folded into a single per-channel scale/shift ----
    if norm:
        mask = mask_ref[...]                            # (1, HWP)
        inv_n = 1.0 / float(C_out * H * W)
        ym = y * mask                                   # zero out wrap columns
        mean = jnp.sum(ym) * inv_n
        var = jnp.maximum(jnp.sum(ym * y) * inv_n - mean * mean, 0.0)
        scale = lax.rsqrt(var + eps) * p[:, 1:2]        # (C_out, 1)  rsqrt*gamma
        shift = p[:, 2:3] - mean * scale                # (C_out, 1)  beta - mean*scale
        y = y * scale + shift                           # 2 full-tile passes total

    # ---- Activation ----
    if prelu:
        y = jnp.where(y > 0, y, p[:, 3:4] * y)          # per-channel slope
    else:
        y = jnp.maximum(y, 0.0)

    # ---- Residual: reuse the resident center tap (dy=1, dx=1) of the im2col matrix ----
    if residual:
        x0 = patches[4 * C_in_p: 4 * C_in_p + C_out, :]
        y = y + x0.astype(jnp.float32)

    out_ref[0] = y.astype(out_ref.dtype)


def conv_block(x, w, b, gamma, beta, alpha, *, norm=True, prelu=True,
               residual=False, eps=1e-5, compute_dtype=jnp.float32):
    """x: (N, C_in, H, W). w: (C_out, C_in, 3, 3). Returns (N, C_out, H, W) in x.dtype."""
    N, C_in, H, W = x.shape
    C_out = w.shape[0]
    assert H >= 2 and W >= 2, "reflect padding requires H, W >= 2"
    assert w.shape == (C_out, C_in, 3, 3)
    residual = bool(residual) and (C_in == C_out)

    Wp = W + 2
    HWP = H * Wp                        # lane-flattened output row length
    Lraw = (H + 2) * Wp
    Lpad = _round_up(Lraw + 2, 128)     # every tap lane-slice stays in bounds; lane-aligned
    C_in_p = _round_up(C_in, 8)         # sublane-aligned tap blocks in the im2col matrix

    # ---- glue (plain JAX): reflect pad spatial, zero-pad channels, flatten, lane-pad ----
    xp = jnp.pad(x, ((0, 0), (0, 0), (1, 1), (1, 1)), mode="reflect")
    xp = jnp.pad(xp, ((0, 0), (0, C_in_p - C_in), (0, 0), (0, 0)))
    xflat = xp.reshape(N, C_in_p, Lraw)
    xflat = jnp.pad(xflat, ((0, 0), (0, 0), (0, Lpad - Lraw))).astype(compute_dtype)

    # weights -> tap-major, channel-minor, lane-dense (C_out, 9*C_in_p)
    wpad = jnp.pad(w, ((0, 0), (0, C_in_p - C_in), (0, 0), (0, 0)))
    w2 = jnp.transpose(wpad, (0, 2, 3, 1)).reshape(C_out, 9 * C_in_p).astype(compute_dtype)

    # per-channel params packed into one resident tile: [bias, gamma, beta, alpha]
    params = jnp.stack([b, gamma, beta, alpha], axis=1).astype(jnp.float32)   # (C_out, 4)

    # validity mask over the (W+2)-strided flattened rows
    mask = ((jnp.arange(HWP) % Wp) < W).astype(jnp.float32).reshape(1, HWP)

    kernel = partial(_conv_block_kernel, norm, prelu, residual, float(eps), H, W)

    out_flat = pl.pallas_call(
        kernel,
        out_shape=jax.ShapeDtypeStruct((N, C_out, HWP), x.dtype),
        grid_spec=pltpu.PrefetchScalarGridSpec(
            num_scalar_prefetch=0,
            grid=(N,),
            in_specs=[
                pl.BlockSpec((1, C_in_p, Lpad), lambda n: (n, 0, 0)),
                pl.BlockSpec((C_out, 9 * C_in_p), lambda n: (0, 0)),
                pl.BlockSpec((C_out, 4), lambda n: (0, 0)),
                pl.BlockSpec((1, HWP), lambda n: (0, 0)),
            ],
            out_specs=pl.BlockSpec((1, C_out, HWP), lambda n: (n, 0, 0)),
        ),
        compiler_params=pltpu.CompilerParams(
            dimension_semantics=("parallel",),
            vmem_limit_bytes=32 * 1024 * 1024,
        ),
    )(xflat, w2, params, mask)

    # drop the 2 wrap columns per row, restore NCHW
    return out_flat.reshape(N, C_out, H, Wp)[:, :, :, :W]


def _reference(x, w, b, gamma, beta, alpha, *, norm=True, prelu=True,
               residual=False, eps=1e-5):
    """Pure-JAX reference matching the PyTorch ConvBlock semantics."""
    N, C_in, H, W = x.shape
    C_out = w.shape[0]
    residual = bool(residual) and (C_in == C_out)
    xpad = jnp.pad(x, ((0, 0), (0, 0), (1, 1), (1, 1)), mode="reflect")
    y = lax.conv_general_dilated(
        xpad, w, window_strides=(1, 1), padding="VALID",
        dimension_numbers=("NCHW", "OIHW", "NCHW"))
    y = y + b[None, :, None, None]
    if norm:
        mean = jnp.mean(y, axis=(1, 2, 3), keepdims=True)
        var = jnp.mean((y - mean) ** 2, axis=(1, 2, 3), keepdims=True)
        y = (y - mean) * lax.rsqrt(var + eps)
        y = y * gamma[None, :, None, None] + beta[None, :, None, None]
    if prelu:
        y = jnp.where(y > 0, y, alpha[None, :, None, None] * y)
    else:
        y = jnp.maximum(y, 0.0)
    if residual:
        y = x + y
    return y


if __name__ == "__main__":
    key = jax.random.PRNGKey(0)
    N, C_in, C_out, H, W = 2, 4, 4, 16, 16

    kx, kw, kb, kw2, kb2 = jax.random.split(key, 5)
    x = jax.random.normal(kx, (N, C_in, H, W), jnp.float32)
    w = jax.random.normal(kw, (C_out, C_in, 3, 3), jnp.float32) * 0.1
    b = jax.random.normal(kb, (C_out,), jnp.float32) * 0.1
    gamma = jnp.ones((C_out,), jnp.float32)        # GroupNorm weight init
    beta = jnp.zeros((C_out,), jnp.float32)        # GroupNorm bias init
    alpha = jnp.full((C_out,), 0.25, jnp.float32)  # PReLU default init

    # 1) f32 path: norm + PReLU + residual
    out = conv_block(x, w, b, gamma, beta, alpha, norm=True, prelu=True,
                     residual=True, compute_dtype=jnp.float32)
    out = jax.block_until_ready(out)
    ref = _reference(x, w, b, gamma, beta, alpha, norm=True, prelu=True, residual=True)
    assert out.shape == (N, C_out, H, W)
    assert jnp.allclose(out, ref, rtol=1e-3, atol=1e-3), \
        f"f32 max abs err = {jnp.max(jnp.abs(out - ref))}"

    # 2) bf16 inputs/weights (f32 accumulation): same config, looser tolerance
    out_bf = conv_block(x, w, b, gamma, beta, alpha, norm=True, prelu=True,
                        residual=True, compute_dtype=jnp.bfloat16)
    out_bf = jax.block_until_ready(out_bf)
    assert jnp.allclose(out_bf, ref, rtol=5e-2, atol=5e-2), \
        f"bf16 max abs err = {jnp.max(jnp.abs(out_bf - ref))}"

    # 3) norm=False / ReLU / C_out != C_in (residual auto-disabled)
    C_out2 = 8
    w_b = jax.random.normal(kw2, (C_out2, C_in, 3, 3), jnp.float32) * 0.1
    b_b = jax.random.normal(kb2, (C_out2,), jnp.float32) * 0.1
    g_b = jnp.ones((C_out2,), jnp.float32)
    be_b = jnp.zeros((C_out2,), jnp.float32)
    a_b = jnp.full((C_out2,), 0.25, jnp.float32)
    out2 = conv_block(x, w_b, b_b, g_b, be_b, a_b, norm=False, prelu=False,
                      residual=True, compute_dtype=jnp.float32)
    out2 = jax.block_until_ready(out2)
    ref2 = _reference(x, w_b, b_b, g_b, be_b, a_b, norm=False, prelu=False, residual=False)
    assert jnp.allclose(out2, ref2, rtol=1e-3, atol=1e-3), \
        f"relu max abs err = {jnp.max(jnp.abs(out2 - ref2))}"

    print("KERNEL_OK")
</pallas_src>

<mosaic_0001>
module attributes {stable_mosaic.version = 11 : i64} {
  func.func @_conv_block_kernel(%arg0: i32, %arg1: memref<1x8x384xf32, #tpu.memory_space<vmem>>, %arg2: memref<4x72xf32, #tpu.memory_space<vmem>>, %arg3: memref<4x4xf32, #tpu.memory_space<vmem>>, %arg4: memref<1x288xf32, #tpu.memory_space<vmem>>, %arg5: memref<1x4x288xf32, #tpu.memory_space<vmem>>) attributes {dimension_semantics = [#tpu.dimension_semantics<parallel>], iteration_bounds = array<i64: 2>, scalar_prefetch = 0 : i64, scratch_operands = 0 : i64, tpu.core_type = #tpu.core_type<tc>, window_params = [{transform_indices = @transform_0, window_bounds = array<i64: 1, 8, 384>}, {pipeline_mode = #tpu.pipeline_mode<synchronous>, transform_indices = @transform_1, window_bounds = array<i64: 4, 72>}, {pipeline_mode = #tpu.pipeline_mode<synchronous>, transform_indices = @transform_2, window_bounds = array<i64: 4, 4>}, {pipeline_mode = #tpu.pipeline_mode<synchronous>, transform_indices = @transform_3, window_bounds = array<i64: 1, 288>}, {transform_indices = @transform_4, window_bounds = array<i64: 1, 4, 288>}]} {
    %c0 = arith.constant 0 : index
    %c0_0 = arith.constant 0 : index
    %c0_1 = arith.constant 0 : index
    %0 = vector.load %arg1[%c0, %c0_0, %c0_1] : memref<1x8x384xf32, #tpu.memory_space<vmem>>, vector<1x8x384xf32>
    %1 = vector.shape_cast %0 : vector<1x8x384xf32> to vector<8x384xf32>
    %2 = vector.extract_strided_slice %1 {offsets = [0, 0], sizes = [8, 288], strides = [1, 1]} : vector<8x384xf32> to vector<8x288xf32>
    %3 = vector.extract_strided_slice %1 {offsets = [0, 1], sizes = [8, 288], strides = [1, 1]} : vector<8x384xf32> to vector<8x288xf32>
    %4 = vector.extract_strided_slice %1 {offsets = [0, 2], sizes = [8, 288], strides = [1, 1]} : vector<8x384xf32> to vector<8x288xf32>
    %5 = vector.extract_strided_slice %1 {offsets = [0, 18], sizes = [8, 288], strides = [1, 1]} : vector<8x384xf32> to vector<8x288xf32>
    %6 = vector.extract_strided_slice %1 {offsets = [0, 19], sizes = [8, 288], strides = [1, 1]} : vector<8x384xf32> to vector<8x288xf32>
    %7 = vector.extract_strided_slice %1 {offsets = [0, 20], sizes = [8, 288], strides = [1, 1]} : vector<8x384xf32> to vector<8x288xf32>
    %8 = vector.extract_strided_slice %1 {offsets = [0, 36], sizes = [8, 288], strides = [1, 1]} : vector<8x384xf32> to vector<8x288xf32>
    %9 = vector.extract_strided_slice %1 {offsets = [0, 37], sizes = [8, 288], strides = [1, 1]} : vector<8x384xf32> to vector<8x288xf32>
    %10 = vector.extract_strided_slice %1 {offsets = [0, 38], sizes = [8, 288], strides = [1, 1]} : vector<8x384xf32> to vector<8x288xf32>
    %11 = tpu.concatenate %2, %3, %4, %5, %6, %7, %8, %9, %10 in 0 : vector<8x288xf32>, vector<8x288xf32>, vector<8x288xf32>, vector<8x288xf32>, vector<8x288xf32>, vector<8x288xf32>, vector<8x288xf32>, vector<8x288xf32>, vector<8x288xf32> -> vector<72x288xf32>
    %c0_2 = arith.constant 0 : index
    %c0_3 = arith.constant 0 : index
    %12 = vector.load %arg2[%c0_2, %c0_3] : memref<4x72xf32, #tpu.memory_space<vmem>>, vector<4x72xf32>
    %cst = arith.constant dense<0.000000e+00> : vector<4x288xf32>
    %13 = tpu.matmul %12, %11, %cst {dimension_numbers = #tpu.dot_dimension_numbers<[1], [0], [0], [1], [0, 0, 1, 1], [], []>} : vector<4x72xf32>, vector<72x288xf32>, vector<4x288xf32> -> vector<4x288xf32>
    %c0_4 = arith.constant 0 : index
    %c0_5 = arith.constant 0 : index
    %14 = vector.load %arg3[%c0_4, %c0_5] : memref<4x4xf32, #tpu.memory_space<vmem>>, vector<4x4xf32>
    %15 = vector.extract_strided_slice %14 {offsets = [0, 0], sizes = [4, 1], strides = [1, 1]} : vector<4x4xf32> to vector<4x1xf32>
    %16 = vector.broadcast %15 : vector<4x1xf32> to vector<4x288xf32>
    %17 = arith.addf %13, %16 : vector<4x288xf32>
    %c0_6 = arith.constant 0 : index
    %c0_7 = arith.constant 0 : index
    %18 = vector.load %arg4[%c0_6, %c0_7] : memref<1x288xf32, #tpu.memory_space<vmem>>, vector<1x288xf32>
    %19 = vector.broadcast %18 : vector<1x288xf32> to vector<4x288xf32>
    %20 = arith.mulf %17, %19 : vector<4x288xf32>
    %21 = vector.shape_cast %20 : vector<4x288xf32> to vector<1x4x288xf32>
    %cst_8 = arith.constant dense<0.000000e+00> : vector<1xf32>
    %22 = vector.multi_reduction <add>, %21, %cst_8 [1, 2] : vector<1x4x288xf32> to vector<1xf32>
    %23 = vector.shape_cast %22 : vector<1xf32> to vector<1x1x1xf32>
    %24 = vector.extract %23[0, 0, 0] : f32 from vector<1x1x1xf32>
    %cst_9 = arith.constant 9.765625E-4 : f32
    %25 = arith.mulf %24, %cst_9 : f32
    %26 = arith.mulf %20, %17 : vector<4x288xf32>
    %27 = vector.shape_cast %26 : vector<4x288xf32> to vector<1x4x288xf32>
    %cst_10 = arith.constant dense<0.000000e+00> : vector<1xf32>
    %28 = vector.multi_reduction <add>, %27, %cst_10 [1, 2] : vector<1x4x288xf32> to vector<1xf32>
    %29 = vector.shape_cast %28 : vector<1xf32> to vector<1x1x1xf32>
    %30 = vector.extract %29[0, 0, 0] : f32 from vector<1x1x1xf32>
    %cst_11 = arith.constant 9.765625E-4 : f32
    %31 = arith.mulf %30, %cst_11 : f32
    %32 = arith.mulf %25, %25 : f32
    %33 = arith.subf %31, %32 : f32
    %cst_12 = arith.constant 0.000000e+00 : f32
    %34 = arith.maximumf %33, %cst_12 : f32
    %cst_13 = arith.constant 9.99999974E-6 : f32
    %35 = arith.addf %34, %cst_13 : f32
    %36 = math.rsqrt %35 : f32
    %37 = vector.extract_strided_slice %14 {offsets = [0, 1], sizes = [4, 1], strides = [1, 1]} : vector<4x4xf32> to vector<4x1xf32>
    %38 = vector.broadcast %36 : f32 to vector<4x1xf32>
    %39 = arith.mulf %38, %37 : vector<4x1xf32>
    %40 = vector.extract_strided_slice %14 {offsets = [0, 2], sizes = [4, 1], strides = [1, 1]} : vector<4x4xf32> to vector<4x1xf32>
    %41 = vector.broadcast %25 : f32 to vector<4x1xf32>
    %42 = arith.mulf %41, %39 : vector<4x1xf32>
    %43 = arith.subf %40, %42 : vector<4x1xf32>
    %44 = vector.broadcast %39 : vector<4x1xf32> to vector<4x288xf32>
    %45 = arith.mulf %17, %44 : vector<4x288xf32>
    %46 = vector.broadcast %43 : vector<4x1xf32> to vector<4x288xf32>
    %47 = arith.addf %45, %46 : vector<4x288xf32>
    %cst_14 = arith.constant 0.000000e+00 : f32
    %48 = vector.broadcast %cst_14 : f32 to vector<4x288xf32>
    %49 = arith.cmpf ogt, %47, %48 : vector<4x288xf32>
    %50 = vector.extract_strided_slice %14 {offsets = [0, 3], sizes = [4, 1], strides = [1, 1]} : vector<4x4xf32> to vector<4x1xf32>
    %51 = vector.broadcast %50 : vector<4x1xf32> to vector<4x288xf32>
    %52 = arith.mulf %51, %47 : vector<4x288xf32>
    %53 = arith.select %49, %47, %52 : vector<4x288xi1>, vector<4x288xf32>
    %54 = vector.extract_strided_slice %11 {offsets = [32, 0], sizes = [4, 288], strides = [1, 1]} : vector<72x288xf32> to vector<4x288xf32>
    %55 = arith.addf %53, %54 : vector<4x288xf32>
    %c0_15 = arith.constant 0 : index
    %c0_16 = arith.constant 0 : index
    %c0_17 = arith.constant 0 : index
    %56 = vector.load %arg5[%c0_15, %c0_16, %c0_17] : memref<1x4x288xf32, #tpu.memory_space<vmem>>, vector<1x4x288xf32>
    %57 = vector.shape_cast %56 : vector<1x4x288xf32> to vector<4x288xf32>
    %58 = vector.shape_cast %55 : vector<4x288xf32> to vector<1x4x288xf32>
    tpu.vector_store %arg5[%c0_15, %c0_16, %c0_17], %58 {strides = array<i32>} : memref<1x4x288xf32, #tpu.memory_space<vmem>>, vector<1x4x288xf32>,
    return
  }
  func.func @transform_0(%arg0: i32) -> (i32, i32, i32) {
    %c0_i32 = arith.constant 0 : i32
    %c0_i32_0 = arith.constant 0 : i32
    %c0_i32_1 = arith.constant 0 : i32
    return %arg0, %c0_i32, %c0_i32_0 : i32, i32, i32
  }
  func.func @transform_1(%arg0: i32) -> (i32, i32) {
    %c0_i32 = arith.constant 0 : i32
    %c0_i32_0 = arith.constant 0 : i32
    %c0_i32_1 = arith.constant 0 : i32
    return %c0_i32, %c0_i32_0 : i32, i32
  }
  func.func @transform_2(%arg0: i32) -> (i32, i32) {
    %c0_i32 = arith.constant 0 : i32
    %c0_i32_0 = arith.constant 0 : i32
    %c0_i32_1 = arith.constant 0 : i32
    return %c0_i32, %c0_i32_0 : i32, i32
  }
  func.func @transform_3(%arg0: i32) -> (i32, i32) {
    %c0_i32 = arith.constant 0 : i32
    %c0_i32_0 = arith.constant 0 : i32
    %c0_i32_1 = arith.constant 0 : i32
    return %c0_i32, %c0_i32_0 : i32, i32
  }
  func.func @transform_4(%arg0: i32) -> (i32, i32, i32) {
    %c0_i32 = arith.constant 0 : i32
    %c0_i32_0 = arith.constant 0 : i32
    %c0_i32_1 = arith.constant 0 : i32
    return %arg0, %c0_i32, %c0_i32_0 : i32, i32, i32
  }
}

</mosaic_0001>

<bundles_post_ra>
// kernel: tpu_custom_call.1
= control target key start
LH: loop header
LB: loop body
LE: loop exit
PB: predicated region body
PF: predicated region fallthrough
CT: control target
= control target key end

     0   :  { %9 = vsyncpa [#allocation3], 0  ;;  %s1309_s0 = inlined_call_operand.hbm [shape: f32[2,8,384], index: 0, kind: input, shape index: {}]   ;;  %s1310_s1 = inlined_call_operand.hbm [shape: f32[4,72], index: 1, kind: input, shape index: {}]   ;;  %s1311_s2 = inlined_call_operand.vmem [shape: f32[4,4], index: 2, kind: input, shape index: {}]   ;;  %s1312_s3 = inlined_call_operand.vmem [shape: f32[1,288], index: 3, kind: input, shape index: {}]   ;;  %s1313_s4 = inlined_call_operand.hbm [shape: f32[2,4,288], index: 4, kind: output, shape index: {}]  }
   0x1   :  { %11 = vsyncpa [#allocation3 + $0x1], 0 }
   0x2   :  { %12 = vsyncpa [#allocation6], 0 }
   0x3   :  { %13 = vsyncpa [#allocation4], 0 }
   0x4   :  { %15 = vsyncpa [#allocation4 + $0x1], 0  ;;  %s1053_s15 = smov 0   ;;  %s1055_s16 = smov 0  }
   0x5   :  { %s1057_s17 = smov 0   ;;  %s1059_s18 = smov 0  }
   0x6 LB: > { %s1074_s19 = sadd.s32 4294967295, %s1006_s18   ;;  %s685_s20 = sadd.s32 4294967294, %s1006_s18   ;;  %s1006_s18 = sphi %s1059_s18, %s1337_s18   ;;  %s1002_s17 = sphi %s1057_s17, %s1336_s17   ;;  %s998_s16 = sphi %s1055_s16, %s1335_s16   ;;  %s994_s15 = sphi %s1053_s15, %s1334_s15  }
   0x7   : > { %p41_p0 = scmp.ne.s32.totalorder %s998_s16, %s994_s15  ;;  %p1314_p1 = scmp.eq.s32.totalorder %s1074_s19, 0 }
   0x8   : > { %p134_p3 = scmp.eq.s32.totalorder %s685_s20, 1  ;;  %p686_p5 = scmp.ge.s32.totalorder %s1006_s18, 1 }
   0x9   : > { %p1083_p4 = por %p1314_p1, %p41_p0  ;;  %p141_p7 = scmp.lt.s32.totalorder %s1006_s18, 3 }
   0xa   : > { %p1088_p6 = por %p134_p3, %p41_p0  ;;  %s1008_s24 = smov [#allocation5]  }
   0xb   : > { %s1317_s21 = scalar_select %p1083_p4, 1, 0 }
   0xc   : > { %s1318_s22 = scalar_select %p1088_p6, 1, 0 }
   0xd   : > { %p1093_p8 = pnand %p686_p5, %p141_p7  ;;  %s154_s25 = sshll.u32 %s1008_s24, 4  ;;  %s155_s25 = int_to_ptr.vmem [resolvable:$true] %s154_s25 }
   0xe   : > { %s1101_s26 = sadd.s32 1, %s1006_s18   ;;  %s28_s30 = sadd.s32 1, %s1002_s17 }
   0xf   : > { %s1319_s23 = scalar_select %p1093_p8, 1, 0 }
  0x10   : > { %p775_p10 = pneg %p1093_p8  ;;  %s25_s28 = ssub.s32 %s1006_s18, %s1101_s26 }
  0x11   : > { %p1111_p12 = scmp.eq.s32.totalorder %s25_s28, 0  ;;  %s878_s7 = scalar_lea.hbm %s1310_s1, 64 }
  0x12   : > { %p1105_p11 = pnand %p775_p10, %p1314_p1  ;;  %p879_p0 = scmp.ne.s32.totalorder %s1310_s1, %s878_s7 }
  0x13   : > { %s1321_s29 = scalar_select %p1111_p12, 1, 0 }
  0x14   : > { %p880_p3 = pneg %p1105_p11  ;;  %p885_p10 = scmp.lt.u32.totalorder %s878_s7, %s1310_s1 }
  0x16   : > { %p881_p5 = pnand %p880_p3, %p879_p0 }
  0x18   : > { %p882_p7 = pneg %p881_p5 }
  0x1a   : > { %p887_p9 = pnand %p885_p10, %p882_p7 }
  0x1c   : > { %890 = shalt.err (!%p887_p9)
}
  0x1d   : > { %s891_s12 = scalar_lea.vmem %s155_s25, 64  ;;  %p899_p6 = scmp.lt.s32.totalorder %s155_s25, %s155_s25 }
  0x1e   : > { %p892_p1 = scmp.ne.s32.totalorder %s155_s25, %s891_s12  ;;  %p900_p4 = scmp.lt.s32.totalorder %s891_s12, %s891_s12 }
  0x20   : > { %p894_p2 = pnand %p892_p1, %p880_p3  ;;  %p901_p8 = por %p900_p4, %p899_p6 }
  0x22   : > { %p895_p13 = pneg %p894_p2 }
  0x24   : > { %p902_p12 = pnand %p901_p8, %p895_p13 }
  0x26   : > { %905 = shalt.err (!%p902_p12)
}
  0x27   : > { %778 = dma.hbm_to_vmem [thread:$0]  (!%p1105_p11), %s1310_s1, 64, %s155_s25, [#allocation6]  }
  0x28   : > { %p1322_p1 = scmp.ne.s32.totalorder %s1321_s29, 0  ;;  %p36_p2 = scmp.eq.s32.totalorder %s1006_s18, 0 }
  0x29   : > { %p1323_p4 = scmp.ne.s32.totalorder %s1002_s17, %s998_s16  ;;  %p1324_p6 = scmp.eq.s32.totalorder %s1074_s19, 1 }
  0x2a   : > { %s1137_s20 = scalar_select %p1322_p1, %s1002_s17, %s28_s30  }
  0x2b   : > { %p1145_p8 = por %p1324_p6, %p1323_p4  ;;  %p788_p9 = scmp.lt.s32.totalorder %s1006_s18, 2 }
  0x2c   : > { %s171_s27 = sand.u32 1, %s1002_s17   ;;  %p1326_p12 = pmov %p1323_p4 }
  0x2d   : > { %s756_s28 = smul.u32 24, %s171_s27  ;;  %s172_s9 = scalar_lea.sflag [#allocation3], %s171_s27 }
  0x2e   : > { %p37_p13 = por %p36_p2, %p1326_p12  ;;  %s757_s5 = smul.u32 384, %s1006_s18 }
  0x2f   : > { %s175_s7 = scalar_lea.vmem [#allocation2], %s756_s28  ;;  %s911_s13 = scalar_lea.hbm %s1309_s0, 768 }
  0x30   : > { %p1155_p0 = pnand %p788_p9, %p37_p13  ;;  %s1162_s30 = scalar_lea.hbm %s1309_s0, %s757_s5 }
  0x31   : > { %s183_s8 = sshll.u32 %s175_s7, 4  ;;  %s906_s10 = scalar_lea.hbm %s1162_s30, 384  ;;  %s1164_s8 = int_to_ptr.vmem [resolvable:$true] %s183_s8 }
  0x32   : > { %p907_p11 = scmp.ne.s32.totalorder %s1162_s30, %s906_s10  ;;  %p908_p3 = pneg %p1155_p0 }
  0x33   : > { %p912_p10 = scmp.lt.u32.totalorder %s1162_s30, %s1309_s0  ;;  %p913_p1 = scmp.lt.u32.totalorder %s911_s13, %s906_s10 }
  0x34   : > { %p909_p5 = pnand %p908_p3, %p907_p11  ;;  %p915_p4 = scmp.lt.u32.totalorder %s906_s10, %s1162_s30 }
  0x35   : > { %p914_p2 = por %p913_p1, %p912_p10 }
  0x36   : > { %p910_p7 = pneg %p909_p5 }
  0x37   : > { %p916_p6 = por %p915_p4, %p914_p2 }
  0x39   : > { %p917_p9 = pnand %p916_p6, %p910_p7 }
  0x3b   : > { %920 = shalt.err (!%p917_p9)
}
  0x3c   : > { %s921_s27 = scalar_lea.vmem %s1164_s8, 384  ;;  %s1009_s28 = smov [#allocation2]  }
  0x3d   : > { %p922_p12 = scmp.ne.s32.totalorder %s1164_s8, %s921_s27  ;;  %s926_s25 = sshll.u32 %s1009_s28, 4  ;;  %s927_s25 = int_to_ptr.vmem [resolvable:$false] %s926_s25 }
  0x3e   : > { %s928_s29 = scalar_lea.vmem %s927_s25, 768  ;;  %p929_p5 = scmp.lt.s32.totalorder %s1164_s8, %s927_s25 }
  0x3f   : > { %p924_p13 = pnand %p922_p12, %p908_p3  ;;  %p930_p10 = scmp.lt.s32.totalorder %s928_s29, %s921_s27 }
  0x41   : > { %p925_p11 = pneg %p924_p13  ;;  %p931_p1 = por %p930_p10, %p929_p5 }
  0x43   : > { %p932_p2 = pnand %p931_p1, %p925_p11 }
  0x45   : > { %935 = shalt.err (!%p932_p2)
}
  0x46   : > { %782 = dma.hbm_to_vmem [thread:$0]  (!%p1155_p0), %s1162_s30, 384, %s1164_s8, %s172_s9  }
  0x47   : > { %p1328_p7 = scmp.ne.s32.totalorder %s1319_s23, 0 }
  0x48   : > { %s1194_s7 = sand.u32 (!%p1328_p7), 1, %s998_s16   ;;  %p1329_p3 = scmp.ne.s32.totalorder (!%p1328_p7), %s1317_s21, 0 }
  0x49   : > { %192 = sbr.rel (%p1328_p7) target bundleno = 1012 (0x3f4), region = 36  ;;  %s195_s11 = scalar_lea.sflag (!%p1328_p7), [#allocation3], %s1194_s7 }
  0x4a   : > { %s758_s10 = smul.u32 (!%p1328_p7), 24, %s1194_s7 }
  0x4c   : > { %s198_s12 = scalar_lea.vmem (!%p1328_p7), [#allocation2], %s758_s10 }
  0x50   : > { %981 = dma.done.wait (%p1329_p3), %s195_s11, 384  }
  0x51   : > { %983 = vsyncadd (%p1329_p3), %s195_s11, 4294966912  ;;  %p1330_p4 = scmp.eq.s32.totalorder %s1074_s19, 0 }
  0x53   : > { %985 = dma.done.wait (%p1330_p4), [#allocation6], 64   ;;  %p1331_p0 = pmov %p1330_p4 }
  0x54   : > { %v1010_v0 = vmov 0.0|0.0   ;;  %v228_v1 = vld [vmem:[%s198_s12 + $0x8] sm:$0xff]  ;;  %v229_v2 = vld [vmem:[%s198_s12 + $0x10] sm:$0xff]  ;;  %s1011_s23 = smov 126   ;;  %s1012_s6 = smov 127   ;;  %v227_v4 = vld [vmem:[%s198_s12] sm:$0xff] }
  0x55   : > { %987 = vsyncadd (%p1331_p0), [#allocation6], 4294967232  ;;  %744 = vmatprep.subr.bf16.mxu1 %v1010_v0  ;;  %v846_v3 = vpack.i.bf16 %v229_v2, %v228_v1  ;;  %s1013_s30 = smov 110   ;;  %s1014_s21 = smov 109   ;;  %v1016_v5 = vmov 0.0   ;;  %vm1018_vm0 = vmmov 0  }
  0x56   : > { %s1015_s8 = smov 108   ;;  %404 = vmatprep.mubr.f32.mxu0 %v1016_v5  ;;  %s1017_s9 = smov 92   ;;  %725 = vmatprep.mubr.msk.f32.mxu1 %vm1018_vm0, %v1016_v5  ;;  %v1020_v6 = vmov 0   ;;  %v1212_v7 = vld [vmem:[%s1311_s2] sm:$0xf]  ;;  %vm239_vm1 = vcmask 1039360  }
  0x57   : > { %847 = vrot.lane.b32.xlu1 %v846_v3, %s1011_s23  ;;  %842 = vrot.lane.b32.xlu0 %v846_v3, %s1012_s6  ;;  %s1019_s13 = smov 91   ;;  %s1021_s14 = smov 90   ;;  %vm263_vm2 = vcmask 900096   ;;  %vm251_vm3 = vcmask 1031168   ;;  %vm275_vm4 = vcmask 891904   ;;  %vm287_vm5 = vcmask 883712  }
  0x58   : > { %871 = vset.pattern.permute.xlu0 %v1020_v6  ;;  %vm299_vm6 = vcmask 752640   ;;  %vm311_vm7 = vcmask 744448   ;;  %vm323_vm8 = vcmask 736256   ;;  %v329_v62 = vld [vmem:[#allocation5] sm:$0xf]  ;;  %vm336_vm9 = vcmask 588800  }
  0x59   : > { %vm501_vm10 = vcmask 1043456   ;;  %vm505_vm11 = vcmask 257024   ;;  %s766_s5 = smul.u32 192, %s1074_s19  ;;  %s591_s19 = scalar_lea.sflag [#allocation4], %s1194_s7 }
  0x5b   : > { %852 = vrot.lane.b32.xlu1 %v846_v3, %s1013_s30  ;;  %233 = vrot.lane.b32.xlu0 %v227_v4, %s1012_s6 }
  0x5f   : > { %257 = vrot.lane.b32.xlu1 %v227_v4, %s1013_s30  ;;  %245 = vrot.lane.b32.xlu0 %v227_v4, %s1011_s23  ;;  %s1023_s30 = smov 0.0  }
  0x63   : > { %273 = vrot.lane.b32.xlu1 %v229_v2, %s1014_s21  ;;  %271 = vrot.lane.b32.xlu0 %v228_v1, %s1014_s21 }
  0x67   : > { %269 = vrot.lane.b32.xlu1 %v227_v4, %s1014_s21  ;;  %857 = vrot.lane.b32.xlu0 %v846_v3, %s1015_s8 }
  0x6b   : > { %862 = vrot.lane.b32.xlu1 %v846_v3, %s1017_s9  ;;  %281 = vrot.lane.b32.xlu0 %v227_v4, %s1015_s8 }
  0x6f   : > { %293 = vrot.lane.b32.xlu1 %v227_v4, %s1017_s9  ;;  %867 = vrot.lane.b32.xlu0 %v846_v3, %s1019_s13  ;;  %v483_v3 = vlaneseq }
  0x73   : > { %319 = vrot.lane.b32.xlu1 %v228_v1, %s1021_s14  ;;  %305 = vrot.lane.b32.xlu0 %v227_v4, %s1019_s13  ;;  %s1025_s13 = smov 1  }
  0x77   : > { %317 = vrot.lane.b32.xlu1 %v227_v4, %s1021_s14  ;;  %321 = vrot.lane.b32.xlu0 %v229_v2, %s1021_s14  ;;  %s759_s14 = smul.u32 12, %s1194_s7 }
  0x79   : > { %s226_s27 = scalar_lea.vmem [#allocation7], %s759_s14 }
  0x7a   : > { %s605_s28 = sshll.u32 %s226_s27, 4  ;;  %s1267_s28 = int_to_ptr.vmem [resolvable:$true] %s605_s28 }
  0x7b   : > { %333 = vperm.xlu0 %871, %v1212_v7  }
  0xc9   : > { %v848_v8 = vpop.permute.xlu1 %847  ;;  %v843_v9 = vpop.permute.xlu0 %842 }
  0xca   : > { %v845_v10 = vunpack.i.h.bf16 %v843_v9  ;;  %v844_v11 = vunpack.i.l.bf16 %v843_v9  ;;  %v850_v12 = vunpack.i.h.bf16 %v848_v8  ;;  %v849_v13 = vunpack.i.l.bf16 %v848_v8 }
  0xcc   : > { %v745_v14 = vpack.c.bf16 %v845_v10, %v229_v2  ;;  %v241_v15 = vsel %vm239_vm1, %v844_v11, %v845_v10  ;;  %v253_v24 = vsel %vm251_vm3, %v849_v13, %v850_v12 }
  0xcd   : > { %v853_v16 = vpop.permute.xlu1 %852  ;;  %v234_v17 = vpop.permute.xlu0 %233  ;;  %v728_v18 = vpack.c.bf16 %v241_v15, %v228_v1 }
  0xce   : > { %v855_v19 = vunpack.i.h.bf16 %v853_v16  ;;  %v854_v20 = vunpack.i.l.bf16 %v853_v16  ;;  %v240_v21 = vsel %vm239_vm1, %v234_v17, %v844_v11  ;;  %746 = vmatpush3.bf16.msra.mxu1 %v745_v14 }
  0xcf   : > { %729 = vmatprep.subr.bf16.mxu0 %v728_v18  ;;  %747 = vmatprep.subr.bf16.mxu1 %v1010_v0  ;;  %v730_v22 = vpack.c.bf16 %v240_v21, %v227_v4  ;;  %v484_v4 = vshrl.u32 %v483_v3, 7 }
  0xd0   : > { %v748_v23 = vpack.c.bf16 %v855_v19, %v850_v12  ;;  %v265_v25 = vsel %vm263_vm2, %v854_v20, %v855_v19 }
  0xd1   : > { %v258_v26 = vpop.permute.xlu1 %257  ;;  %731 = vmatpush1.bf16.msra.mxu0 %v730_v22  ;;  %v246_v27 = vpop.permute.xlu0 %245  ;;  %v732_v28 = vpack.c.bf16 %v265_v25, %v253_v24  ;;  %v493_v6 = vsub.s32 2, %v484_v4  ;;  %v485_v9 = vsub.s32 0, %v484_v4  ;;  %v489_v10 = vsub.s32 1, %v484_v4 }
  0xd2   : > { %v264_v29 = vsel %vm263_vm2, %v258_v26, %v854_v20  ;;  %v252_v30 = vsel %vm251_vm3, %v246_v27, %v849_v13  ;;  %749 = vmatpush3.bf16.msra.mxu1 %v748_v23 }
  0xd3   : > { %v734_v31 = vpack.c.bf16 %v264_v29, %v252_v30  ;;  %733 = vmatprep.subr.bf16.mxu0 %v732_v28  ;;  %750 = vmatprep.subr.bf16.mxu1 %v1010_v0 }
  0xd5   : > { %v1221_v32 = vpop.permute.xlu1 %273  ;;  %735 = vmatpush1.bf16.msra.mxu0 %v734_v31  ;;  %v272_v33 = vpop.permute.xlu0 %271 }
  0xd6   : > { %v1224_v38 = vsel %vm275_vm4, %v272_v33, %v1221_v32 }
  0xd9   : > { %v270_v34 = vpop.permute.xlu1 %269  ;;  %v858_v35 = vpop.permute.xlu0 %857 }
  0xda   : > { %v860_v36 = vunpack.i.h.bf16 %v858_v35  ;;  %v859_v37 = vunpack.i.l.bf16 %v858_v35  ;;  %v1228_v44 = vsel %vm275_vm4, %v270_v34, %v272_v33 }
  0xdc   : > { %v751_v39 = vpack.c.bf16 %v860_v36, %v1221_v32  ;;  %v289_v40 = vsel %vm287_vm5, %v859_v37, %v860_v36 }
  0xdd   : > { %v863_v41 = vpop.permute.xlu1 %862  ;;  %v282_v42 = vpop.permute.xlu0 %281  ;;  %v736_v43 = vpack.c.bf16 %v289_v40, %v1224_v38 }
  0xde   : > { %v288_v45 = vsel %vm287_vm5, %v282_v42, %v859_v37  ;;  %752 = vmatpush3.bf16.msra.mxu1 %v751_v39  ;;  %v865_v47 = vunpack.i.h.bf16 %v863_v41  ;;  %v864_v48 = vunpack.i.l.bf16 %v863_v41 }
  0xdf   : > { %v738_v46 = vpack.c.bf16 %v288_v45, %v1228_v44  ;;  %737 = vmatprep.subr.bf16.mxu0 %v736_v43  ;;  %753 = vmatprep.subr.bf16.mxu1 %v1010_v0 }
  0xe0   : > { %v301_v54 = vsel %vm299_vm6, %v864_v48, %v865_v47 }
  0xe1   : > { %v294_v49 = vpop.permute.xlu1 %293  ;;  %v868_v50 = vpop.permute.xlu0 %867  ;;  %739 = vmatpush1.bf16.msra.mxu0 %v738_v46 }
  0xe2   : > { %v870_v51 = vunpack.i.h.bf16 %v868_v50  ;;  %v869_v52 = vunpack.i.l.bf16 %v868_v50  ;;  %v300_v59 = vsel %vm299_vm6, %v294_v49, %v864_v48 }
  0xe4   : > { %v754_v53 = vpack.c.bf16 %v870_v51, %v865_v47  ;;  %v313_v55 = vsel %vm311_vm7, %v869_v52, %v870_v51  ;;  %v1022_v51 = vmov 1  }
  0xe5   : > { %v320_v56 = vpop.permute.xlu1 %319  ;;  %v306_v57 = vpop.permute.xlu0 %305  ;;  %v740_v58 = vpack.c.bf16 %v313_v55, %v301_v54  ;;  %872 = vset.pattern.permute.xlu0 %v1022_v51 }
  0xe6   : > { %v312_v60 = vsel %vm311_vm7, %v306_v57, %v869_v52  ;;  %755 = vmatpush3.bf16.msra.mxu1 %v754_v53  ;;  %v1024_v57 = vmov 2  }
  0xe7   : > { %v742_v61 = vpack.c.bf16 %v312_v60, %v300_v59  ;;  %741 = vmatprep.subr.bf16.mxu0 %v740_v58  ;;  %723 = vmatprep.subr.mxu1 %v1016_v5  ;;  %v481_v5 = vld [vmem:[%s1312_s3] sm:$0x7] }
  0xe8   : > { %v494_v14 = vrot.slane %v481_v5, %v493_v6  ;;  %v486_v15 = vrot.slane %v481_v5, %v485_v9  ;;  %v490_v17 = vrot.slane %v481_v5, %v489_v10  ;;  %873 = vset.pattern.permute.xlu1 %v1024_v57 }
  0xe9   : > { %v318_v63 = vpop.permute.xlu1 %317  ;;  %v322_v0 = vpop.permute.xlu0 %321  ;;  %743 = vmatpush1.bf16.msra.mxu0 %v742_v61 }
  0xea   : > { %v325_v1 = vsel %vm323_vm8, %v320_v56, %v322_v0  ;;  %724 = vmatpush3.msra.mxu1 %v322_v0  ;;  %v324_v2 = vsel %vm323_vm8, %v318_v63, %v320_v56 }
  0xeb   : > { %356 = vmatprep.subr.mxu0 %v325_v1  ;;  %726 = vmatmul.mubr.msk.f32.vlgmr.msra.gmra.mrb[0].mxu1 %vm336_vm9, %v329_v62 }
  0xed   : > { %357 = vmatpush1.msra.mxu0 %v324_v2 }
  0xee   : > { %692 = vmatmul.mubr.msk.f32.vlgmr.msra.gmra.mrb[0].mxu0 %vm336_vm9, %v329_v62  ;;  %v1026_v62 = vmov 3  }
  0xfa   : > { %v334_v8 = vpop.permute.xlu0 %333 }
 0x1be   : > { %v477_v11 = vpop.f32.mrb[0].mxu1 }
 0x1bf   : > { %v1236_v12 = vadd.f32 %v477_v11, %v334_v8  ;;  %v727_v13 = vpop.f32.mrb[1].mxu1 }
 0x1c1   : > { %v406_v16 = vpop.f32.mrb[0].mxu0  ;;  %v500_v21 = vmul.f32 %v494_v14, %v1236_v12 }
 0x1c2   : > { %v1238_v18 = vadd.f32 %v406_v16, %v334_v8  ;;  %v408_v19 = vpop.f32.mrb[1].mxu0 }
 0x1c3   : > { %v1240_v20 = vadd.f32 %v408_v19, %v334_v8  ;;  %v520_v28 = vmul.f32 %v500_v21, %v1236_v12  ;;  %v506_v31 = vsel %vm505_vm11, %v500_v21, 0.0 }
 0x1c4   : > { %v498_v22 = vmul.f32 %v486_v15, %v1238_v18 }
 0x1c5   : > { %v499_v23 = vmul.f32 %v490_v17, %v1240_v20  ;;  %v524_v36 = vsel %vm505_vm11, %v520_v28, 0.0 }
 0x1c6   : > { %v518_v24 = vmul.f32 %v498_v22, %v1238_v18  ;;  %v502_v25 = vsel %vm501_vm10, %v498_v22, 0.0 }
 0x1c7   : > { %v519_v26 = vmul.f32 %v499_v23, %v1240_v20  ;;  %v503_v27 = vsel %vm501_vm10, %v499_v23, 0.0 }
 0x1c8   : > { %v504_v29 = vadd.f32 %v503_v27, %v502_v25  ;;  %v521_v30 = vsel %vm501_vm10, %v518_v24, 0.0 }
 0x1c9   : > { %v522_v33 = vsel %vm501_vm10, %v519_v26, 0.0 }
 0x1ca   : > { %v507_v34 = vadd.f32 %v506_v31, %v504_v29  ;;  %v523_v35 = vadd.f32 %v522_v33, %v521_v30 }
 0x1cc   : > { %508 = vadd.xlane.f32.xlu1 %v507_v34  ;;  %v525_v37 = vadd.f32 %v524_v36, %v523_v35 }
 0x1ce   : > { %526 = vadd.xlane.f32.xlu0 %v525_v37 }
 0x259   : > { %v509_v39 = vpop.xlane.xlu1 %508 }
 0x25a   : > { %v510_v40 = vrot.slane %v509_v39, 4 }
 0x25b   : > { %v527_v41 = vpop.xlane.xlu0 %526 }
 0x25c   : > { %v511_v42 = vadd.f32 %v510_v40, %v509_v39  ;;  %v528_v43 = vrot.slane %v527_v41, 4 }
 0x25e   : > { %v512_v45 = vrot.slane %v511_v42, 2  ;;  %v529_v46 = vadd.f32 %v528_v43, %v527_v41 }
 0x260   : > { %v530_v47 = vrot.slane %v529_v46, 2  ;;  %v513_v48 = vadd.f32 %v512_v45, %v511_v42 }
 0x262   : > { %v514_v49 = vrot.slane %v513_v48, 1  ;;  %v531_v50 = vadd.f32 %v530_v47, %v529_v46 }
 0x264   : > { %v515_v52 = vadd.f32 %v514_v49, %v513_v48  ;;  %v532_v53 = vrot.slane %v531_v50, 1 }
 0x266   : > { %760 = vpush %v515_v52  ;;  %v533_v54 = vadd.f32 %v532_v53, %v531_v50 }
 0x268   : > { %762 = vpush %v533_v54 }
 0x297   : > { %s761_s29 = spop %760 }
 0x298   : > { %s517_s10 = smul.f32 0.0009765625, %s761_s29 }
 0x299   : > { %s763_s11 = spop %762 }
 0x29a   : > { %s536_s12 = smul.f32 %s517_s10, %s517_s10  ;;  %v545_v60 = vstv %s517_s10  ;;  %s1265_s10 = scalar_lea.hbm %s1313_s4, %s766_s5 }
 0x29b   : > { %s535_s23 = smul.f32 0.0009765625, %s763_s11  ;;  %s936_s11 = scalar_lea.vmem %s1267_s28, 192 }
 0x29c   : > { %p937_p6 = scmp.ne.s32.totalorder %s1267_s28, %s936_s11 }
 0x29d   : > { %s537_s6 = ssub.f32 %s535_s23, %s536_s12  ;;  %s1027_s12 = smov [#allocation7]  }
 0x29e   : > { %p938_p9 = pnand %p937_p6, %p1145_p8  ;;  %s940_s23 = sshll.u32 %s1027_s12, 4  ;;  %s941_s23 = int_to_ptr.vmem [resolvable:$false] %s940_s23 }
 0x29f   : > { %s538_s21 = smax.f32 %s1023_s30, %s537_s6  ;;  %s942_s6 = scalar_lea.vmem %s941_s23, 384 }
 0x2a0   : > { %s539_s8 = sadd.f32 1e-05, %s538_s21  ;;  %p939_p12 = pneg %p938_p9 }
 0x2a1   : > { %p943_p13 = scmp.lt.s32.totalorder %s1267_s28, %s941_s23  ;;  %p944_p11 = scmp.lt.s32.totalorder %s942_s6, %s936_s11 }
 0x2a2   : > { %v540_v55 = vstv %s539_s8 }
 0x2a3   : > { %876 = vrsqrt.f32 %v540_v55  ;;  %p945_p5 = por %p944_p11, %p943_p13 }
 0x2a5   : > { %p946_p10 = pnand %p945_p5, %p939_p12 }
 0x2ad   : > { %v877_v56 = vpop.eup %876 }
 0x2ae   : > { %764 = vpush %v877_v56 }
 0x2df   : > { %s765_s9 = spop %764 }
 0x2e0   : > { %v543_v58 = vstv %s765_s9 }
 0x2e1   : > { %v544_v59 = vmul.f32 %v543_v58, %v1212_v7 }
 0x2e3   : > { %v546_v61 = vmul.f32 %v545_v60, %v544_v59  ;;  %554 = vperm.xlu0 %872, %v544_v59  }
 0x2e5   : > { %548 = vrot.lane.b32.xlu1 %v546_v61, %s1025_s13 }
 0x2e7   : > { %875 = vset.pattern.permute.xlu0 %v1026_v62 }
 0x357   : > { %v549_v63 = vpop.permute.xlu1 %548 }
 0x358   : > { %v551_v0 = vsub.f32 %v1212_v7, %v549_v63 }
 0x35a   : > { %562 = vperm.xlu1 %873, %v551_v0  }
 0x35e   : > { %874 = vset.pattern.permute.xlu1 %v1026_v62 }
 0x35f   : > { %572 = vperm.xlu1 %874, %v1212_v7  }
 0x362   : > { %v555_v1 = vpop.permute.xlu0 %554 }
 0x363   : > { %v557_v3 = vmul.f32 %v555_v1, %v1238_v18  ;;  %v558_v4 = vmul.f32 %v555_v1, %v1240_v20  ;;  %v559_v6 = vmul.f32 %v555_v1, %v1236_v12 }
 0x3d9   : > { %v563_v2 = vpop.permute.xlu1 %562 }
 0x3da   : > { %v565_v8 = vadd.f32 %v563_v2, %v557_v3  ;;  %v566_v5 = vadd.f32 %v563_v2, %v558_v4  ;;  %v567_v9 = vadd.f32 %v563_v2, %v559_v6 }
 0x3dc   : > { %vm568_vm12 = vcmp.gt.f32.partialorder %v565_v8, 0.0  ;;  %vm569_vm13 = vcmp.gt.f32.partialorder %v566_v5, 0.0  ;;  %vm570_vm14 = vcmp.gt.f32.partialorder %v567_v9, 0.0 }
 0x3de   : > { %v573_v10 = vpop.permute.xlu1 %572 }
 0x3df   : > { %v575_v11 = vmul.f32 %v573_v10, %v565_v8  ;;  %v576_v13 = vmul.f32 %v573_v10, %v566_v5  ;;  %v577_v14 = vmul.f32 %v573_v10, %v567_v9 }
 0x3e1   : > { %v578_v7 = vsel %vm568_vm12, %v565_v8, %v575_v11  ;;  %v579_v15 = vsel %vm569_vm13, %v566_v5, %v576_v13  ;;  %v580_v16 = vsel %vm570_vm14, %v567_v9, %v577_v14 }
 0x3e2   : > { %v581_v12 = vadd.f32 %v578_v7, %v1228_v44  ;;  %v582_v17 = vadd.f32 %v579_v15, %v1224_v38  ;;  %v583_v18 = vadd.f32 %v580_v16, %v1221_v32 }
 0x3e4   : > { %v586_v19 = vcombine.low %v581_v12, %v582_v17  ;;  %589 = vst.msk [vmem:[%s226_s27 + $0x8] sm:$0xf] %vm505_vm11, %v583_v18 }
 0x3e6   : > { %588 = vst [vmem:[%s226_s27] sm:$0xff] %v586_v19 }
 0x3e7   : > { %949 = shalt.err (!%p946_p10)
}
 0x3e8   : > { %s950_s7 = scalar_lea.hbm %s1265_s10, 192  ;;  %s954_s8 = scalar_lea.hbm %s1313_s4, 384 }
 0x3e9   : > { %p951_p1 = scmp.ne.s32.totalorder %s1265_s10, %s950_s7  ;;  %p955_p3 = scmp.lt.u32.totalorder %s1265_s10, %s1313_s4 }
 0x3ea   : > { %p956_p4 = scmp.lt.u32.totalorder %s954_s8, %s950_s7  ;;  %p958_p6 = scmp.lt.u32.totalorder %s950_s7, %s1265_s10 }
 0x3eb   : > { %p952_p2 = pnand %p951_p1, %p1145_p8 }
 0x3ec   : > { %p957_p0 = por %p956_p4, %p955_p3 }
 0x3ed   : > { %p953_p7 = pneg %p952_p2 }
 0x3ee   : > { %p959_p9 = por %p958_p6, %p957_p0 }
 0x3f0   : > { %p960_p12 = pnand %p959_p9, %p953_p7 }
 0x3f2   : > { %963 = shalt.err (!%p960_p12)
}
 0x3f3   : > { %773 = dma.vmem_to_hbm [thread:$0]  (%p1145_p8), %s1267_s28, 192, %s1265_s10, %s591_s19  }
 0x3f4 PF: > { %s617_s14 = sand.u32 1, %s994_s15   ;;  %p1332_p13 = scmp.ne.s32.totalorder %s1318_s22, 0 }
 0x3f5   : > { %p1333_p11 = scmp.ge.s32.totalorder %s1006_s18, 2  ;;  %s618_s5 = scalar_lea.sflag [#allocation4], %s617_s14 }
 0x3f7   : > { %p784_p5 = pnand %p1333_p11, %p1332_p13 }
 0x3f9   : > { %989 = dma.done.wait (!%p784_p5), %s618_s5, 192  }
 0x3fa   : > { %991 = vsyncadd (!%p784_p5), %s618_s5, 4294967104  ;;  %p18_p10 = scmp.ge.s32.totalorder %s1101_s26, 4   ;;  %s1334_s15 = smov %s998_s16 }
 0x3fb   : > { %s1335_s16 = smov %s1002_s17  ;;  %s1336_s17 = smov %s1137_s20 }
 0x3fc   : > { %s1337_s18 = smov %s1101_s26  ;;  %20 = sbr.rel (!%p18_p10) target bundleno = 6 (0x6), region = 85 }
 0x403   :  { %623 = vsyncpa [#allocation3], 1 }
 0x404   :  { %625 = vsyncpa [#allocation3 + $0x1], 1 }
 0x405   :  { %626 = vsyncpa [#allocation6], 1 }
 0x406   :  { %627 = vsyncpa [#allocation4], 1 }
 0x407   :  { %629 = vsyncpa [#allocation4 + $0x1], 1 }

</bundles_post_ra>
